<compile_context>
chip_gen: v5e
topology: v5e:2x2
jax: 0.10.0
libtpu: 0.0.40
codegen_flags: <defaults>
</compile_context>

<pallas_src>
import functools

import jax
import jax.numpy as jnp
from jax.experimental import pallas as pl
from jax.experimental.pallas import tpu as pltpu


def _round_up(x, m):
    return (x + m - 1) // m * m


def _choose_block_rows(n, c, rows, max_block_bytes):
    """Rows of 128 lanes per spatial tile (multiple of 8), ~max_block_bytes of inputs."""
    bytes_per_row = n * (c + 1) * 128 * 4          # score (f32) + labels (int32)
    br = max(8, (max_block_bytes // bytes_per_row) // 8 * 8)
    br = min(br, _round_up(rows, 8))
    return int(br)


def _dice_partial_kernel(n_classes, apply_softmax, score_ref, target_ref, out_ref):
    # score_ref:  (N, C, bR, 128) float32 probabilities (or logits if fused softmax)
    # target_ref: (N, bR, 128)    int32 labels (-1 marks padding)
    # out_ref:    (1, 3, C, 128)  per-tile, per-class partial sums (lane vectors)
    labels = target_ref[...]

    if apply_softmax:
        logits = score_ref[...].astype(jnp.float32)           # (N, C, bR, 128)
        m = jnp.max(logits, axis=1, keepdims=True)
        e = jnp.exp(logits - m)
        inv_denom = 1.0 / jnp.sum(e, axis=1, keepdims=True)   # one divide, reused per class
        probs = e * inv_denom
        valid = labels >= 0                                    # mask padded pixels

    def _sum_rows(x):                                          # (N, bR, 128) -> (1, 128)
        return jnp.sum(jnp.sum(x, axis=0), axis=0, keepdims=True)

    i_rows, y_rows, z_rows = [], [], []
    for c in range(n_classes):                                 # small static unroll
        if apply_softmax:
            s_c = probs[:, c]                                  # (N, bR, 128)
        else:
            s_c = score_ref[:, c].astype(jnp.float32)          # (N, bR, 128)
        mask = labels == c                                     # one-hot (bool)
        i_rows.append(_sum_rows(jnp.where(mask, s_c, 0.0)))    # intersect
        y_rows.append(_sum_rows(mask.astype(jnp.float32)))     # t*t == t (one-hot)
        sq = s_c * s_c
        if apply_softmax:
            sq = jnp.where(valid, sq, 0.0)                     # padded softmax != 0
        z_rows.append(_sum_rows(sq))                           # z_sum

    out_ref[0, 0, :, :] = jnp.concatenate(i_rows, axis=0)      # (C, 128)
    out_ref[0, 1, :, :] = jnp.concatenate(y_rows, axis=0)
    out_ref[0, 2, :, :] = jnp.concatenate(z_rows, axis=0)


def dice_loss(inputs, target, weight=None, softmax=False,
              block_bytes=2 * 1024 * 1024):
    """inputs: (N, C, H, W) float; target: (N, 1, H, W) integer-valued labels."""
    N, C, H, W = inputs.shape
    T = H * W

    if weight is None:
        weight = jnp.ones((C,), jnp.float32)
    else:
        weight = jnp.asarray(weight, jnp.float32)

    score = inputs.astype(jnp.float32).reshape(N, C, T)        # free reshape (no transpose)
    labels = target.reshape(N, T).astype(jnp.int32)

    rows = (T + 127) // 128
    block_rows = _choose_block_rows(N, C, rows, block_bytes)
    rows_p = _round_up(rows, block_rows)
    T_p = rows_p * 128
    if T_p != T:
        # Pad: score with 0 (no contribution), labels with -1 (matches no class).
        score = jnp.pad(score, ((0, 0), (0, 0), (0, T_p - T)))
        labels = jnp.pad(labels, ((0, 0), (0, T_p - T)), constant_values=-1)

    score4 = score.reshape(N, C, rows_p, 128)                  # lane-dense layout
    target3 = labels.reshape(N, rows_p, 128)
    num_tiles = rows_p // block_rows

    kernel = functools.partial(_dice_partial_kernel, C, bool(softmax))
    partials = pl.pallas_call(
        kernel,
        out_shape=jax.ShapeDtypeStruct((num_tiles, 3, C, 128), jnp.float32),
        grid=(num_tiles,),
        in_specs=[
            pl.BlockSpec((N, C, block_rows, 128), lambda s: (0, 0, s, 0)),
            pl.BlockSpec((N, block_rows, 128), lambda s: (0, s, 0)),
        ],
        out_specs=pl.BlockSpec((1, 3, C, 128), lambda s: (s, 0, 0, 0)),
        compiler_params=pltpu.CompilerParams(
            # No cross-step state in the kernel -> spatial axis can be sharded
            # across TensorCores (v7x megacore).
            dimension_semantics=("parallel",),
        ),
    )(score4, target3)

    # Tiny final reduction in plain XLA.
    sums = jnp.sum(partials, axis=(0, 3))                      # (3, C)
    intersect, y_sum, z_sum = sums[0], sums[1], sums[2]
    smooth = jnp.float32(1e-05)
    dice = 1.0 - (2.0 * intersect + smooth) / (z_sum + y_sum + smooth)  # per-class
    return jnp.sum(dice * weight) / C


def _dice_loss_ref(inputs, target, weight=None, softmax=False):
    """Pure-JAX reference mirroring the PyTorch forward."""
    N, C, H, W = inputs.shape
    if softmax:
        inputs = jax.nn.softmax(inputs, axis=1)
    if weight is None:
        weight = [1.0] * C
    tgt = target.reshape(N, H, W).astype(jnp.float32)
    smooth = 1e-05
    loss = 0.0
    for i in range(C):
        s = inputs[:, i]
        t = (tgt == float(i)).astype(jnp.float32)
        intersect = jnp.sum(s * t)
        y_sum = jnp.sum(t * t)
        z_sum = jnp.sum(s * s)
        dice = 1.0 - (2.0 * intersect + smooth) / (z_sum + y_sum + smooth)
        loss = loss + dice * weight[i]
    return loss / C


if __name__ == "__main__":
    key = jax.random.PRNGKey(0)
    k1, k2, k3, k4 = jax.random.split(key, 4)

    # Case 1: probabilities path (matches original usage).
    N, C, H, W = 2, 4, 16, 16
    logits = jax.random.normal(k1, (N, C, H, W), jnp.float32)
    probs = jax.nn.softmax(logits, axis=1)
    target = jax.random.randint(k2, (N, 1, H, W), 0, C).astype(jnp.float32)

    loss = jax.block_until_ready(dice_loss(probs, target))
    ref = _dice_loss_ref(probs, target)
    assert jnp.allclose(loss, ref, rtol=1e-5, atol=1e-6), (float(loss), float(ref))

    # Case 2: fused softmax + class weights.
    w = [0.5, 1.0, 1.5, 2.0]
    loss_sm = jax.block_until_ready(dice_loss(logits, target, weight=w, softmax=True))
    ref_sm = _dice_loss_ref(logits, target, weight=w, softmax=True)
    assert jnp.allclose(loss_sm, ref_sm, rtol=1e-5, atol=1e-6), (float(loss_sm), float(ref_sm))

    # Case 3: spatial size not a multiple of 128 (exercises the padding path).
    N2, C2, H2, W2 = 2, 3, 12, 12
    logits2 = jax.random.normal(k3, (N2, C2, H2, W2), jnp.float32)
    probs2 = jax.nn.softmax(logits2, axis=1)
    target2 = jax.random.randint(k4, (N2, 1, H2, W2), 0, C2).astype(jnp.float32)
    loss2 = jax.block_until_ready(dice_loss(probs2, target2))
    ref2 = _dice_loss_ref(probs2, target2)
    assert jnp.allclose(loss2, ref2, rtol=1e-5, atol=1e-6), (float(loss2), float(ref2))

    print("KERNEL_OK")
</pallas_src>

<mosaic_0001>
module attributes {stable_mosaic.version = 11 : i64} {
  func.func @_dice_partial_kernel(%arg0: i32, %arg1: memref<2x4x8x128xf32, #tpu.memory_space<vmem>>, %arg2: memref<2x8x128xi32, #tpu.memory_space<vmem>>, %arg3: memref<1x3x4x128xf32, #tpu.memory_space<vmem>>) attributes {dimension_semantics = [#tpu.dimension_semantics<parallel>], iteration_bounds = array<i64: 1>, scalar_prefetch = 0 : i64, scratch_operands = 0 : i64, tpu.core_type = #tpu.core_type<tc>, window_params = [{transform_indices = @transform_0, window_bounds = array<i64: 2, 4, 8, 128>}, {transform_indices = @transform_1, window_bounds = array<i64: 2, 8, 128>}, {transform_indices = @transform_2, window_bounds = array<i64: 1, 3, 4, 128>}]} {
    %c0 = arith.constant 0 : index
    %c0_0 = arith.constant 0 : index
    %c0_1 = arith.constant 0 : index
    %0 = vector.load %arg2[%c0, %c0_0, %c0_1] : memref<2x8x128xi32, #tpu.memory_space<vmem>>, vector<2x8x128xi32>
    %c0_2 = arith.constant 0 : index
    %c0_3 = arith.constant 0 : index
    %c0_4 = arith.constant 0 : index
    %c0_5 = arith.constant 0 : index
    %1 = vector.load %arg1[%c0_2, %c0_3, %c0_4, %c0_5] : memref<2x4x8x128xf32, #tpu.memory_space<vmem>>, vector<2x1x8x128xf32>
    %2 = vector.shape_cast %1 : vector<2x1x8x128xf32> to vector<2x8x128xf32>
    %c0_i32 = arith.constant 0 : i32
    %3 = vector.broadcast %c0_i32 : i32 to vector<2x8x128xi32>
    %4 = arith.cmpi eq, %0, %3 : vector<2x8x128xi32>
    %cst = arith.constant 0.000000e+00 : f32
    %5 = vector.broadcast %cst : f32 to vector<2x8x128xf32>
    %6 = arith.select %4, %2, %5 : vector<2x8x128xi1>, vector<2x8x128xf32>
    %cst_6 = arith.constant dense<0.000000e+00> : vector<8x128xf32>
    %7 = vector.multi_reduction <add>, %6, %cst_6 [0] : vector<2x8x128xf32> to vector<8x128xf32>
    %cst_7 = arith.constant dense<0.000000e+00> : vector<128xf32>
    %8 = vector.multi_reduction <add>, %7, %cst_7 [0] : vector<8x128xf32> to vector<128xf32>
    %9 = vector.shape_cast %8 : vector<128xf32> to vector<1x128xf32>
    %10 = arith.extui %4 : vector<2x8x128xi1> to vector<2x8x128xi32>
    %11 = arith.sitofp %10 : vector<2x8x128xi32> to vector<2x8x128xf32>
    %cst_8 = arith.constant dense<0.000000e+00> : vector<8x128xf32>
    %12 = vector.multi_reduction <add>, %11, %cst_8 [0] : vector<2x8x128xf32> to vector<8x128xf32>
    %cst_9 = arith.constant dense<0.000000e+00> : vector<128xf32>
    %13 = vector.multi_reduction <add>, %12, %cst_9 [0] : vector<8x128xf32> to vector<128xf32>
    %14 = vector.shape_cast %13 : vector<128xf32> to vector<1x128xf32>
    %15 = arith.mulf %2, %2 : vector<2x8x128xf32>
    %cst_10 = arith.constant dense<0.000000e+00> : vector<8x128xf32>
    %16 = vector.multi_reduction <add>, %15, %cst_10 [0] : vector<2x8x128xf32> to vector<8x128xf32>
    %cst_11 = arith.constant dense<0.000000e+00> : vector<128xf32>
    %17 = vector.multi_reduction <add>, %16, %cst_11 [0] : vector<8x128xf32> to vector<128xf32>
    %18 = vector.shape_cast %17 : vector<128xf32> to vector<1x128xf32>
    %c0_12 = arith.constant 0 : index
    %c1 = arith.constant 1 : index
    %c0_13 = arith.constant 0 : index
    %c0_14 = arith.constant 0 : index
    %19 = vector.load %arg1[%c0_12, %c1, %c0_13, %c0_14] : memref<2x4x8x128xf32, #tpu.memory_space<vmem>>, vector<2x1x8x128xf32>
    %20 = vector.shape_cast %19 : vector<2x1x8x128xf32> to vector<2x8x128xf32>
    %c1_i32 = arith.constant 1 : i32
    %21 = vector.broadcast %c1_i32 : i32 to vector<2x8x128xi32>
    %22 = arith.cmpi eq, %0, %21 : vector<2x8x128xi32>
    %cst_15 = arith.constant 0.000000e+00 : f32
    %23 = vector.broadcast %cst_15 : f32 to vector<2x8x128xf32>
    %24 = arith.select %22, %20, %23 : vector<2x8x128xi1>, vector<2x8x128xf32>
    %cst_16 = arith.constant dense<0.000000e+00> : vector<8x128xf32>
    %25 = vector.multi_reduction <add>, %24, %cst_16 [0] : vector<2x8x128xf32> to vector<8x128xf32>
    %cst_17 = arith.constant dense<0.000000e+00> : vector<128xf32>
    %26 = vector.multi_reduction <add>, %25, %cst_17 [0] : vector<8x128xf32> to vector<128xf32>
    %27 = vector.shape_cast %26 : vector<128xf32> to vector<1x128xf32>
    %28 = arith.extui %22 : vector<2x8x128xi1> to vector<2x8x128xi32>
    %29 = arith.sitofp %28 : vector<2x8x128xi32> to vector<2x8x128xf32>
    %cst_18 = arith.constant dense<0.000000e+00> : vector<8x128xf32>
    %30 = vector.multi_reduction <add>, %29, %cst_18 [0] : vector<2x8x128xf32> to vector<8x128xf32>
    %cst_19 = arith.constant dense<0.000000e+00> : vector<128xf32>
    %31 = vector.multi_reduction <add>, %30, %cst_19 [0] : vector<8x128xf32> to vector<128xf32>
    %32 = vector.shape_cast %31 : vector<128xf32> to vector<1x128xf32>
    %33 = arith.mulf %20, %20 : vector<2x8x128xf32>
    %cst_20 = arith.constant dense<0.000000e+00> : vector<8x128xf32>
    %34 = vector.multi_reduction <add>, %33, %cst_20 [0] : vector<2x8x128xf32> to vector<8x128xf32>
    %cst_21 = arith.constant dense<0.000000e+00> : vector<128xf32>
    %35 = vector.multi_reduction <add>, %34, %cst_21 [0] : vector<8x128xf32> to vector<128xf32>
    %36 = vector.shape_cast %35 : vector<128xf32> to vector<1x128xf32>
    %c0_22 = arith.constant 0 : index
    %c2 = arith.constant 2 : index
    %c0_23 = arith.constant 0 : index
    %c0_24 = arith.constant 0 : index
    %37 = vector.load %arg1[%c0_22, %c2, %c0_23, %c0_24] : memref<2x4x8x128xf32, #tpu.memory_space<vmem>>, vector<2x1x8x128xf32>
    %38 = vector.shape_cast %37 : vector<2x1x8x128xf32> to vector<2x8x128xf32>
    %c2_i32 = arith.constant 2 : i32
    %39 = vector.broadcast %c2_i32 : i32 to vector<2x8x128xi32>
    %40 = arith.cmpi eq, %0, %39 : vector<2x8x128xi32>
    %cst_25 = arith.constant 0.000000e+00 : f32
    %41 = vector.broadcast %cst_25 : f32 to vector<2x8x128xf32>
    %42 = arith.select %40, %38, %41 : vector<2x8x128xi1>, vector<2x8x128xf32>
    %cst_26 = arith.constant dense<0.000000e+00> : vector<8x128xf32>
    %43 = vector.multi_reduction <add>, %42, %cst_26 [0] : vector<2x8x128xf32> to vector<8x128xf32>
    %cst_27 = arith.constant dense<0.000000e+00> : vector<128xf32>
    %44 = vector.multi_reduction <add>, %43, %cst_27 [0] : vector<8x128xf32> to vector<128xf32>
    %45 = vector.shape_cast %44 : vector<128xf32> to vector<1x128xf32>
    %46 = arith.extui %40 : vector<2x8x128xi1> to vector<2x8x128xi32>
    %47 = arith.sitofp %46 : vector<2x8x128xi32> to vector<2x8x128xf32>
    %cst_28 = arith.constant dense<0.000000e+00> : vector<8x128xf32>
    %48 = vector.multi_reduction <add>, %47, %cst_28 [0] : vector<2x8x128xf32> to vector<8x128xf32>
    %cst_29 = arith.constant dense<0.000000e+00> : vector<128xf32>
    %49 = vector.multi_reduction <add>, %48, %cst_29 [0] : vector<8x128xf32> to vector<128xf32>
    %50 = vector.shape_cast %49 : vector<128xf32> to vector<1x128xf32>
    %51 = arith.mulf %38, %38 : vector<2x8x128xf32>
    %cst_30 = arith.constant dense<0.000000e+00> : vector<8x128xf32>
    %52 = vector.multi_reduction <add>, %51, %cst_30 [0] : vector<2x8x128xf32> to vector<8x128xf32>
    %cst_31 = arith.constant dense<0.000000e+00> : vector<128xf32>
    %53 = vector.multi_reduction <add>, %52, %cst_31 [0] : vector<8x128xf32> to vector<128xf32>
    %54 = vector.shape_cast %53 : vector<128xf32> to vector<1x128xf32>
    %c0_32 = arith.constant 0 : index
    %c3 = arith.constant 3 : index
    %c0_33 = arith.constant 0 : index
    %c0_34 = arith.constant 0 : index
    %55 = vector.load %arg1[%c0_32, %c3, %c0_33, %c0_34] : memref<2x4x8x128xf32, #tpu.memory_space<vmem>>, vector<2x1x8x128xf32>
    %56 = vector.shape_cast %55 : vector<2x1x8x128xf32> to vector<2x8x128xf32>
    %c3_i32 = arith.constant 3 : i32
    %57 = vector.broadcast %c3_i32 : i32 to vector<2x8x128xi32>
    %58 = arith.cmpi eq, %0, %57 : vector<2x8x128xi32>
    %cst_35 = arith.constant 0.000000e+00 : f32
    %59 = vector.broadcast %cst_35 : f32 to vector<2x8x128xf32>
    %60 = arith.select %58, %56, %59 : vector<2x8x128xi1>, vector<2x8x128xf32>
    %cst_36 = arith.constant dense<0.000000e+00> : vector<8x128xf32>
    %61 = vector.multi_reduction <add>, %60, %cst_36 [0] : vector<2x8x128xf32> to vector<8x128xf32>
    %cst_37 = arith.constant dense<0.000000e+00> : vector<128xf32>
    %62 = vector.multi_reduction <add>, %61, %cst_37 [0] : vector<8x128xf32> to vector<128xf32>
    %63 = vector.shape_cast %62 : vector<128xf32> to vector<1x128xf32>
    %64 = arith.extui %58 : vector<2x8x128xi1> to vector<2x8x128xi32>
    %65 = arith.sitofp %64 : vector<2x8x128xi32> to vector<2x8x128xf32>
    %cst_38 = arith.constant dense<0.000000e+00> : vector<8x128xf32>
    %66 = vector.multi_reduction <add>, %65, %cst_38 [0] : vector<2x8x128xf32> to vector<8x128xf32>
    %cst_39 = arith.constant dense<0.000000e+00> : vector<128xf32>
    %67 = vector.multi_reduction <add>, %66, %cst_39 [0] : vector<8x128xf32> to vector<128xf32>
    %68 = vector.shape_cast %67 : vector<128xf32> to vector<1x128xf32>
    %69 = arith.mulf %56, %56 : vector<2x8x128xf32>
    %cst_40 = arith.constant dense<0.000000e+00> : vector<8x128xf32>
    %70 = vector.multi_reduction <add>, %69, %cst_40 [0] : vector<2x8x128xf32> to vector<8x128xf32>
    %cst_41 = arith.constant dense<0.000000e+00> : vector<128xf32>
    %71 = vector.multi_reduction <add>, %70, %cst_41 [0] : vector<8x128xf32> to vector<128xf32>
    %72 = vector.shape_cast %71 : vector<128xf32> to vector<1x128xf32>
    %73 = tpu.concatenate %9, %27, %45, %63 in 0 : vector<1x128xf32>, vector<1x128xf32>, vector<1x128xf32>, vector<1x128xf32> -> vector<4x128xf32>
    %c0_42 = arith.constant 0 : index
    %c0_43 = arith.constant 0 : index
    %c0_44 = arith.constant 0 : index
    %c0_45 = arith.constant 0 : index
    %74 = vector.load %arg3[%c0_42, %c0_43, %c0_44, %c0_45] : memref<1x3x4x128xf32, #tpu.memory_space<vmem>>, vector<1x1x4x128xf32>
    %75 = vector.shape_cast %74 : vector<1x1x4x128xf32> to vector<4x128xf32>
    %76 = vector.shape_cast %73 : vector<4x128xf32> to vector<1x1x4x128xf32>
    tpu.vector_store %arg3[%c0_42, %c0_43, %c0_44, %c0_45], %76 {strides = array<i32>} : memref<1x3x4x128xf32, #tpu.memory_space<vmem>>, vector<1x1x4x128xf32>,
    %77 = tpu.concatenate %14, %32, %50, %68 in 0 : vector<1x128xf32>, vector<1x128xf32>, vector<1x128xf32>, vector<1x128xf32> -> vector<4x128xf32>
    %c0_46 = arith.constant 0 : index
    %c1_47 = arith.constant 1 : index
    %c0_48 = arith.constant 0 : index
    %c0_49 = arith.constant 0 : index
    %78 = vector.load %arg3[%c0_46, %c1_47, %c0_48, %c0_49] : memref<1x3x4x128xf32, #tpu.memory_space<vmem>>, vector<1x1x4x128xf32>
    %79 = vector.shape_cast %78 : vector<1x1x4x128xf32> to vector<4x128xf32>
    %80 = vector.shape_cast %77 : vector<4x128xf32> to vector<1x1x4x128xf32>
    tpu.vector_store %arg3[%c0_46, %c1_47, %c0_48, %c0_49], %80 {strides = array<i32>} : memref<1x3x4x128xf32, #tpu.memory_space<vmem>>, vector<1x1x4x128xf32>,
    %81 = tpu.concatenate %18, %36, %54, %72 in 0 : vector<1x128xf32>, vector<1x128xf32>, vector<1x128xf32>, vector<1x128xf32> -> vector<4x128xf32>
    %c0_50 = arith.constant 0 : index
    %c2_51 = arith.constant 2 : index
    %c0_52 = arith.constant 0 : index
    %c0_53 = arith.constant 0 : index
    %82 = vector.load %arg3[%c0_50, %c2_51, %c0_52, %c0_53] : memref<1x3x4x128xf32, #tpu.memory_space<vmem>>, vector<1x1x4x128xf32>
    %83 = vector.shape_cast %82 : vector<1x1x4x128xf32> to vector<4x128xf32>
    %84 = vector.shape_cast %81 : vector<4x128xf32> to vector<1x1x4x128xf32>
    tpu.vector_store %arg3[%c0_50, %c2_51, %c0_52, %c0_53], %84 {strides = array<i32>} : memref<1x3x4x128xf32, #tpu.memory_space<vmem>>, vector<1x1x4x128xf32>,
    return
  }
  func.func @transform_0(%arg0: i32) -> (i32, i32, i32, i32) {
    %c0_i32 = arith.constant 0 : i32
    %c0_i32_0 = arith.constant 0 : i32
    %c0_i32_1 = arith.constant 0 : i32
    %c0_i32_2 = arith.constant 0 : i32
    return %c0_i32, %c0_i32_0, %arg0, %c0_i32_1 : i32, i32, i32, i32
  }
  func.func @transform_1(%arg0: i32) -> (i32, i32, i32) {
    %c0_i32 = arith.constant 0 : i32
    %c0_i32_0 = arith.constant 0 : i32
    %c0_i32_1 = arith.constant 0 : i32
    return %c0_i32, %arg0, %c0_i32_0 : i32, i32, i32
  }
  func.func @transform_2(%arg0: i32) -> (i32, i32, i32, i32) {
    %c0_i32 = arith.constant 0 : i32
    %c0_i32_0 = arith.constant 0 : i32
    %c0_i32_1 = arith.constant 0 : i32
    %c0_i32_2 = arith.constant 0 : i32
    return %arg0, %c0_i32, %c0_i32_0, %c0_i32_1 : i32, i32, i32, i32
  }
}

</mosaic_0001>

<bundles_post_ra>
// kernel: tpu_custom_call.1
= control target key start
LH: loop header
LB: loop body
LE: loop exit
PB: predicated region body
PF: predicated region fallthrough
CT: control target
= control target key end

     0   :  { %7 = vsyncpa [#allocation3], 0  ;;  %s407_s0 = inlined_call_operand.hbm [shape: f32[2,4,8,128], index: 0, kind: input, shape index: {}]   ;;  %s408_s1 = inlined_call_operand.hbm [shape: s32[2,8,128], index: 1, kind: input, shape index: {}]   ;;  %s409_s2 = inlined_call_operand.hbm [shape: f32[1,3,4,128], index: 2, kind: output, shape index: {}]  }
   0x1   :  { %8 = vsyncpa [#allocation6], 0 }
   0x2   :  { %9 = vsyncpa [#allocation4], 0  ;;  %s14_s11 = sshll.u32 %s407_s0, 4  ;;  %s312_s12 = smov [#allocation2]   ;;  %s15_s11 = int_to_ptr.hbm [resolvable:$true] %s14_s11 }
   0x3   :  { %s16_s13 = sshll.u32 %s312_s12, 4  ;;  %s27_s16 = sshll.u32 %s408_s1, 4  ;;  %s17_s13 = int_to_ptr.vmem [resolvable:$true] %s16_s13  ;;  %s28_s16 = int_to_ptr.hbm [resolvable:$true] %s27_s16 }
   0x4   :  { %s313_s17 = smov 128   ;;  %s314_s18 = smov 8  }
   0x5   :  { %22 = dma.hbm_to_vmem [thread:$0]  %s15_s11, 1024, %s17_s13, [#allocation3], %s313_s17, %s313_s17, %s314_s18  }
   0x6   :  { %s315_s19 = smov [#allocation5]  }
   0x7   :  { %s29_s20 = sshll.u32 %s315_s19, 4  ;;  %s30_s20 = int_to_ptr.vmem [resolvable:$true] %s29_s20 }
   0x8   :  { %35 = dma.hbm_to_vmem [thread:$0]  %s28_s16, 256, %s30_s20, [#allocation6], %s313_s17, %s313_s17, %s314_s18  }
   0x9   :  { %306 = dma.done.wait [#allocation3], 1024  }
   0xa   :  { %307 = vsyncadd [#allocation3], 4294966272 }
   0xb   :  { %308 = dma.done.wait [#allocation6], 256  }
   0xc   :  { %309 = vsyncadd [#allocation6], 4294967040  ;;  %v44_v0 = vld [vmem:[#allocation5] sm:$0xff]  ;;  %v45_v1 = vld [vmem:[#allocation5 + $0x8] sm:$0xff]  ;;  %v316_v24 = vmov 0.0   ;;  %vm181_vm8 = vcmask 1040384  }
   0xd   :  { %v46_v2 = vld [vmem:[#allocation2] sm:$0xff]  ;;  %vm48_vm0 = vcmp.eq.s32.totalorder %v44_v0, 0  ;;  %vm49_vm1 = vcmp.eq.s32.totalorder %v45_v1, 0  ;;  %v343_v4 = vld [vmem:[#allocation2 + $0x8] sm:$0xff]  ;;  %vm82_vm2 = vcmp.eq.s32.totalorder %v44_v0, 1  ;;  %vm83_vm3 = vcmp.eq.s32.totalorder %v45_v1, 1 }
   0xe   :  { %v341_v3 = vld [vmem:[#allocation2 + $0x20] sm:$0xff]  ;;  %v345_v5 = vld [vmem:[#allocation2 + $0x28] sm:$0xff]  ;;  %v347_v6 = vmul.f32 %v46_v2, %v46_v2  ;;  %v50_v7 = vsel %vm48_vm0, %v46_v2, 0.0  ;;  %v84_v9 = vsel %vm82_vm2, %v343_v4, 0.0  ;;  %v354_v10 = vld [vmem:[#allocation2 + $0x10] sm:$0xff]  ;;  %vm116_vm4 = vcmp.eq.s32.totalorder %v44_v0, 2 }
   0xf   :  { %v51_v8 = vsel %vm49_vm1, %v341_v3, 0.0  ;;  %v356_v11 = vld [vmem:[#allocation2 + $0x30] sm:$0xff]  ;;  %v85_v13 = vsel %vm83_vm3, %v345_v5, 0.0  ;;  %vm117_vm5 = vcmp.eq.s32.totalorder %v45_v1, 2  ;;  %v360_v14 = vld [vmem:[#allocation2 + $0x18] sm:$0xff]  ;;  %v118_v17 = vsel %vm116_vm4, %v354_v10, 0.0 }
  0x10   :  { %v52_v12 = vadd.f32 %v51_v8, %v50_v7  ;;  %v362_v15 = vld [vmem:[#allocation2 + $0x38] sm:$0xff]  ;;  %v86_v16 = vadd.f32 %v85_v13, %v84_v9  ;;  %v119_v18 = vsel %vm117_vm5, %v356_v11, 0.0  ;;  %vm150_vm6 = vcmp.eq.s32.totalorder %v44_v0, 3  ;;  %s317_s0 = smov [#allocation7]   ;;  %s204_s23 = sshll.u32 %s409_s2, 4  ;;  %s205_s23 = int_to_ptr.hbm [resolvable:$true] %s204_s23 }
  0x11   :  { %v120_v20 = vadd.f32 %v119_v18, %v118_v17  ;;  %vm151_vm7 = vcmp.eq.s32.totalorder %v45_v1, 3  ;;  %v152_v21 = vsel %vm150_vm6, %v360_v14, 0.0  ;;  %v218_v25 = vsel %vm48_vm0, 1.0, %v316_v24  ;;  %s202_s1 = sshll.u32 %s317_s0, 4  ;;  %s318_s24 = smov 64   ;;  %s203_s1 = int_to_ptr.vmem [resolvable:$true] %s202_s1 }
  0x12   :  { %v53_v19 = vrot.slane %v52_v12, 4  ;;  %v87_v22 = vrot.slane %v86_v16, 4  ;;  %v153_v23 = vsel %vm151_vm7, %v362_v15, 0.0  ;;  %v219_v26 = vsel %vm49_vm1, 1.0, %v316_v24  ;;  %s319_s25 = smov 4  }
  0x13   :  { %v121_v28 = vrot.slane %v120_v20, 4  ;;  %v154_v29 = vadd.f32 %v153_v23, %v152_v21  ;;  %v63_v30 = vadd.f32 %v219_v26, %v218_v25  ;;  %vm183_vm9 = vcmask 1041408  }
  0x14   :  { %v54_v27 = vadd.f32 %v53_v19, %v52_v12  ;;  %v88_v31 = vadd.f32 %v87_v22, %v86_v16  ;;  %v220_v32 = vsel %vm82_vm2, 1.0, %v316_v24  ;;  %v221_v33 = vsel %vm83_vm3, 1.0, %v316_v24 }
  0x15   :  { %v222_v34 = vsel %vm116_vm4, 1.0, %v316_v24  ;;  %v122_v36 = vadd.f32 %v121_v28, %v120_v20  ;;  %v155_v37 = vrot.slane %v154_v29, 4  ;;  %v64_v38 = vrot.slane %v63_v30, 4 }
  0x16   :  { %v55_v35 = vrot.slane %v54_v27, 2  ;;  %v89_v39 = vrot.slane %v88_v31, 2  ;;  %vm185_vm10 = vcmask 1042432   ;;  %v97_v40 = vadd.f32 %v221_v33, %v220_v32 }
  0x17   :  { %v223_v41 = vsel %vm117_vm5, 1.0, %v316_v24  ;;  %v224_v42 = vsel %vm150_vm6, 1.0, %v316_v24  ;;  %v123_v44 = vrot.slane %v122_v36, 2  ;;  %v156_v45 = vadd.f32 %v155_v37, %v154_v29 }
  0x18   :  { %v56_v43 = vadd.f32 %v55_v35, %v54_v27  ;;  %v65_v46 = vadd.f32 %v64_v38, %v63_v30  ;;  %v90_v47 = vadd.f32 %v89_v39, %v88_v31  ;;  %v98_v48 = vrot.slane %v97_v40, 4 }
  0x19   :  { %v131_v49 = vadd.f32 %v223_v41, %v222_v34  ;;  %v225_v50 = vsel %vm151_vm7, 1.0, %v316_v24  ;;  %v124_v52 = vadd.f32 %v123_v44, %v122_v36  ;;  %v157_v53 = vrot.slane %v156_v45, 2 }
  0x1a   :  { %v57_v51 = vrot.slane %v56_v43, 1  ;;  %v66_v54 = vrot.slane %v65_v46, 2  ;;  %v91_v55 = vrot.slane %v90_v47, 1  ;;  %v99_v56 = vadd.f32 %v98_v48, %v97_v40 }
  0x1b   :  { %v132_v57 = vrot.slane %v131_v49, 4  ;;  %v165_v58 = vadd.f32 %v225_v50, %v224_v42  ;;  %v125_v60 = vrot.slane %v124_v52, 1  ;;  %v158_v61 = vadd.f32 %v157_v53, %v156_v45 }
  0x1c   :  { %v58_v59 = vadd.f32 %v57_v51, %v56_v43  ;;  %v67_v62 = vadd.f32 %v66_v54, %v65_v46  ;;  %v92_v63 = vadd.f32 %v91_v55, %v90_v47  ;;  %v100_v0 = vrot.slane %v99_v56, 2 }
  0x1d   :  { %v133_v2 = vadd.f32 %v132_v57, %v131_v49  ;;  %v166_v7 = vrot.slane %v165_v58, 4  ;;  %v126_v8 = vadd.f32 %v125_v60, %v124_v52  ;;  %v159_v9 = vrot.slane %v158_v61, 1 }
  0x1e   :  { %v68_v1 = vrot.slane %v67_v62, 1  ;;  %v71_v12 = vmul.f32 %v341_v3, %v341_v3  ;;  %v182_v13 = vsel %vm181_vm8, %v58_v59, %v92_v63  ;;  %v101_v16 = vadd.f32 %v100_v0, %v99_v56 }
  0x1f   :  { %v134_v17 = vrot.slane %v133_v2, 2  ;;  %v167_v18 = vadd.f32 %v166_v7, %v165_v58  ;;  %v160_v19 = vadd.f32 %v159_v9, %v158_v61  ;;  %v184_v20 = vsel %vm183_vm9, %v182_v13, %v126_v8 }
  0x20   :  { %v69_v21 = vadd.f32 %v68_v1, %v67_v62  ;;  %v72_v22 = vadd.f32 %v71_v12, %v347_v6  ;;  %v102_v23 = vrot.slane %v101_v16, 1  ;;  %v104_v26 = vmul.f32 %v343_v4, %v343_v4 }
  0x21   :  { %v135_v24 = vadd.f32 %v134_v17, %v133_v2  ;;  %v168_v25 = vrot.slane %v167_v18, 2  ;;  %v186_v27 = vsel %vm185_vm10, %v184_v20, %v160_v19  ;;  %v105_v28 = vmul.f32 %v345_v5, %v345_v5 }
  0x22   :  { %v73_v3 = vrot.slane %v72_v22, 4  ;;  %v138_v29 = vmul.f32 %v354_v10, %v354_v10  ;;  %187 = vst [vmem:[#allocation7] sm:$0xf] %v186_v27  ;;  %v103_v30 = vadd.f32 %v102_v23, %v101_v16  ;;  %v139_v6 = vmul.f32 %v356_v11, %v356_v11 }
  0x23   :  { %v136_v31 = vrot.slane %v135_v24, 1  ;;  %v169_v32 = vadd.f32 %v168_v25, %v167_v18  ;;  %v106_v34 = vadd.f32 %v105_v28, %v104_v26  ;;  %v172_v4 = vmul.f32 %v360_v14, %v360_v14 }
  0x24   :  { %v74_v33 = vadd.f32 %v73_v3, %v72_v22  ;;  %v173_v35 = vmul.f32 %v362_v15, %v362_v15  ;;  %v188_v37 = vsel %vm181_vm8, %v69_v21, %v103_v30  ;;  %v140_v10 = vadd.f32 %v139_v6, %v138_v29 }
  0x25   :  { %v137_v36 = vadd.f32 %v136_v31, %v135_v24  ;;  %v170_v5 = vrot.slane %v169_v32, 1  ;;  %v107_v39 = vrot.slane %v106_v34, 4 }
  0x26   :  { %v75_v38 = vrot.slane %v74_v33, 2  ;;  %v174_v40 = vadd.f32 %v173_v35, %v172_v4  ;;  %v141_v11 = vrot.slane %v140_v10, 4 }
  0x27   :  { %v171_v41 = vadd.f32 %v170_v5, %v169_v32  ;;  %v189_v42 = vsel %vm183_vm9, %v188_v37, %v137_v36  ;;  %v108_v44 = vadd.f32 %v107_v39, %v106_v34 }
  0x28   :  { %v76_v43 = vadd.f32 %v75_v38, %v74_v33  ;;  %v175_v45 = vrot.slane %v174_v40, 4  ;;  %v142_v46 = vadd.f32 %v141_v11, %v140_v10 }
  0x29   :  { %v190_v14 = vsel %vm185_vm10, %v189_v42, %v171_v41  ;;  %v109_v47 = vrot.slane %v108_v44, 2 }
  0x2a   :  { %192 = vst [vmem:[#allocation7 + $0x4] sm:$0xf] %v190_v14  ;;  %v77_v15 = vrot.slane %v76_v43, 1  ;;  %v176_v48 = vadd.f32 %v175_v45, %v174_v40  ;;  %v143_v49 = vrot.slane %v142_v46, 2 }
  0x2b   :  { %v110_v50 = vadd.f32 %v109_v47, %v108_v44 }
  0x2c   :  { %v177_v51 = vrot.slane %v176_v48, 2  ;;  %v144_v52 = vadd.f32 %v143_v49, %v142_v46  ;;  %v78_v53 = vadd.f32 %v77_v15, %v76_v43 }
  0x2d   :  { %v111_v54 = vrot.slane %v110_v50, 1 }
  0x2e   :  { %v178_v55 = vadd.f32 %v177_v51, %v176_v48  ;;  %v145_v56 = vrot.slane %v144_v52, 1 }
  0x2f   :  { %v112_v57 = vadd.f32 %v111_v54, %v110_v50 }
  0x30   :  { %v179_v58 = vrot.slane %v178_v55, 1  ;;  %v146_v59 = vadd.f32 %v145_v56, %v144_v52 }
  0x31   :  { %v193_v61 = vsel %vm181_vm8, %v78_v53, %v112_v57 }
  0x32   :  { %v180_v60 = vadd.f32 %v179_v58, %v178_v55  ;;  %v194_v62 = vsel %vm183_vm9, %v193_v61, %v146_v59 }
  0x34   :  { %v195_v63 = vsel %vm185_vm10, %v194_v62, %v180_v60 }
  0x35   :  { %197 = vst [vmem:[#allocation7 + $0x8] sm:$0xf] %v195_v63 }
  0x36   :  { %210 = dma.vmem_to_hbm [thread:$0]  %s203_s1, 192, %s205_s23, [#allocation4], %s318_s24, %s318_s24, %s319_s25  }
  0x37   :  { %310 = dma.done.wait [#allocation4], 192  }
  0x38   :  { %311 = vsyncadd [#allocation4], 4294967104 }
  0x39   :  { %215 = vsyncpa [#allocation3], 1 }
  0x3a   :  { %216 = vsyncpa [#allocation6], 1 }
  0x3b   :  { %217 = vsyncpa [#allocation4], 1 }

</bundles_post_ra>
